<compile_context>
chip_gen: v5e
topology: v5e:2x2
jax: 0.10.0
libtpu: 0.0.40
codegen_flags: <defaults>
</compile_context>

<pallas_src>
import jax
import jax.numpy as jnp
from jax.experimental import pallas as pl
from jax.experimental.pallas import tpu as pltpu

_SUB = 8                               # f32 sublane tile
_LANE = 128                            # lane tile
_TARGET_BLOCK_BYTES = 2 * 1024 * 1024  # ~2 MiB per buffer; safe on v5e/v6e/v7x


def _scale_kernel(w_ref, x_ref, o_ref):
    # w_ref : SMEM f32[1]           -- the module's scalar `weight` Parameter
    # x_ref : VMEM (rows_blk, W)    -- input tile, original dtype
    # o_ref : VMEM (rows_blk, W)    -- output tile, promoted dtype
    # f32 compute keeps v5e happy (no bf16 VPU there); the cast is a no-op for
    # f32 inputs and free filler under the HBM/DMA bottleneck otherwise.
    o_ref[...] = (x_ref[...].astype(jnp.float32) * w_ref[0]).astype(o_ref.dtype)


def _pick_lane_width(n):
    # Prefer the widest lane-dense last dim (unmasked full-lane vst, big DMAs).
    for w in (1024, 512, 256, 128):
        if n % w == 0:
            return w
    return None


def module_of_user_forward(x, weight, *, rows_per_block=None):
    """Pallas equivalent of `ModuleOfUser.forward`: input_ * weight (weight shape [1])."""
    x = jnp.asarray(x)
    w = jnp.asarray(weight, jnp.float32).reshape(1)
    out_dtype = jnp.result_type(x.dtype, jnp.float32)

    n = x.size
    lane_w = _pick_lane_width(n) if n else None
    if lane_w is None:
        # TODO(synk): ragged element counts could use a masked-store remainder
        # block; for now let XLA fuse the scalar multiply (avoids pad+slice
        # HBM passes that would dominate this memory-bound op).
        return (x.astype(out_dtype) * w[0]).reshape(x.shape)

    rows = n // lane_w
    x2 = x.reshape(rows, lane_w)          # row-major flatten: pure reshape, no copy-pad

    itemsize = max(jnp.dtype(x.dtype).itemsize, jnp.dtype(out_dtype).itemsize)
    if rows_per_block is None:
        rows_per_block = max(1, _TARGET_BLOCK_BYTES // (itemsize * lane_w))
    if rows_per_block >= rows:
        rows_blk = rows                   # single block == full array dims: always legal
    else:
        rows_blk = max(_SUB, (rows_per_block // _SUB) * _SUB)  # keep (8,128) tiling legal
        rows_blk = min(rows_blk, rows)

    grid = (pl.cdiv(rows, rows_blk),)     # partial last block handled by Pallas masking

    out2 = pl.pallas_call(
        _scale_kernel,
        out_shape=jax.ShapeDtypeStruct((rows, lane_w), out_dtype),
        grid=grid,
        in_specs=[
            pl.BlockSpec(memory_space=pltpu.MemorySpace.SMEM),   # scalar weight
            pl.BlockSpec((rows_blk, lane_w), lambda i: (i, 0)),  # input tile
        ],
        out_specs=pl.BlockSpec((rows_blk, lane_w), lambda i: (i, 0)),
        compiler_params=pltpu.CompilerParams(
            dimension_semantics=("parallel",),  # shard row blocks across v7x's 2 TCs
        ),
        cost_estimate=pl.CostEstimate(
            flops=n,
            transcendentals=0,
            bytes_accessed=n * (jnp.dtype(x.dtype).itemsize
                                + jnp.dtype(out_dtype).itemsize) + 4,
        ),
    )(w, x2)

    return out2.reshape(x.shape)


if __name__ == "__main__":
    key = jax.random.PRNGKey(0)
    k_x, k_w, k_y = jax.random.split(key, 3)

    # Parameter has shape [1] (module initializes it to ones; use a non-trivial
    # value so the multiply is actually exercised).
    weight = jax.random.normal(k_w, (1,), jnp.float32)

    # Primary check: small NCHW activation (2, 4, 16, 16) -> lane-dense (2, 1024).
    x = jax.random.normal(k_x, (2, 4, 16, 16), jnp.float32)
    out = jax.block_until_ready(module_of_user_forward(x, weight))
    ref = x * weight.reshape(1)
    assert out.shape == x.shape and out.dtype == ref.dtype
    assert jnp.allclose(out, ref, atol=1e-6, rtol=1e-6), "mismatch vs JAX reference"

    # Multi-block / partial-last-block path (what large activations hit): force
    # a small block so the parallel 1-D grid and boundary masking are exercised.
    y = jax.random.normal(k_y, (24, 1024), jnp.float32)
    out_y = jax.block_until_ready(
        module_of_user_forward(y, weight, rows_per_block=16))
    assert jnp.allclose(out_y, y * weight.reshape(1), atol=1e-6, rtol=1e-6)

    # Ragged element count (not a multiple of 128): fused XLA fallback path.
    z = jax.random.normal(k_x, (3, 5, 7), jnp.float32)
    out_z = jax.block_until_ready(module_of_user_forward(z, weight))
    assert jnp.allclose(out_z, z * weight.reshape(1), atol=1e-6, rtol=1e-6)

    print("KERNEL_OK")
</pallas_src>

<mosaic_0001>
module attributes {stable_mosaic.version = 11 : i64} {
  func.func @_scale_kernel(%arg0: i32, %arg1: memref<1xf32, #tpu.memory_space<smem>>, %arg2: memref<2x1024xf32, #tpu.memory_space<vmem>>, %arg3: memref<2x1024xf32, #tpu.memory_space<vmem>>) attributes {dimension_semantics = [#tpu.dimension_semantics<parallel>], iteration_bounds = array<i64: 1>, scalar_prefetch = 0 : i64, scratch_operands = 0 : i64, tpu.core_type = #tpu.core_type<tc>, window_params = [{transform_indices = @transform_0, window_bounds = array<i64: 1>}, {transform_indices = @transform_1, window_bounds = array<i64: 2, 1024>}, {transform_indices = @transform_2, window_bounds = array<i64: 2, 1024>}]} {
    %c0 = arith.constant 0 : index
    %c0_0 = arith.constant 0 : index
    %0 = vector.load %arg2[%c0, %c0_0] : memref<2x1024xf32, #tpu.memory_space<vmem>>, vector<2x1024xf32>
    %c0_1 = arith.constant 0 : index
    %1 = memref.load %arg1[%c0_1] : memref<1xf32, #tpu.memory_space<smem>>
    %2 = vector.broadcast %1 : f32 to vector<2x1024xf32>
    %3 = arith.mulf %0, %2 : vector<2x1024xf32>
    %c0_2 = arith.constant 0 : index
    %c0_3 = arith.constant 0 : index
    %4 = vector.load %arg3[%c0_2, %c0_3] : memref<2x1024xf32, #tpu.memory_space<vmem>>, vector<2x1024xf32>
    tpu.vector_store %arg3[%c0_2, %c0_3], %3 {strides = array<i32>} : memref<2x1024xf32, #tpu.memory_space<vmem>>, vector<2x1024xf32>,
    return
  }
  func.func @transform_0(%arg0: i32) -> i32 {
    %c0_i32 = arith.constant 0 : i32
    %c0_i32_0 = arith.constant 0 : i32
    return %c0_i32 : i32
  }
  func.func @transform_1(%arg0: i32) -> (i32, i32) {
    %c0_i32 = arith.constant 0 : i32
    %c0_i32_0 = arith.constant 0 : i32
    return %arg0, %c0_i32 : i32, i32
  }
  func.func @transform_2(%arg0: i32) -> (i32, i32) {
    %c0_i32 = arith.constant 0 : i32
    %c0_i32_0 = arith.constant 0 : i32
    return %arg0, %c0_i32 : i32, i32
  }
}

</mosaic_0001>

<bundles_post_ra>
// kernel: tpu_custom_call.1
= control target key start
LH: loop header
LB: loop body
LE: loop exit
PB: predicated region body
PF: predicated region fallthrough
CT: control target
= control target key end

     0   :  { %8 = vsyncpa [#allocation4], 0  ;;  %s132_s0 = inlined_call_operand.<no memory space> [shape: f32[1], index: 0, kind: input, shape index: {}]   ;;  %s133_s1 = inlined_call_operand.hbm [shape: f32[2,1024], index: 1, kind: input, shape index: {}]   ;;  %s134_s2 = inlined_call_operand.hbm [shape: f32[2,1024], index: 2, kind: output, shape index: {}]  }
   0x1   :  { %9 = vsyncpa [#allocation5], 0  ;;  %s17_s11 = sshll.u32 %s133_s1, 4  ;;  %s106_s12 = smov [#allocation3]   ;;  %s18_s11 = int_to_ptr.hbm [resolvable:$true] %s17_s11 }
   0x2   :  { %s19_s13 = sshll.u32 %s106_s12, 4  ;;  %s20_s13 = int_to_ptr.vmem [resolvable:$true] %s19_s13 }
   0x3   :  { %22 = dma.hbm_to_vmem [thread:$0]  %s18_s11, 256, %s20_s13, [#allocation4]  }
   0x4   :  { %102 = dma.done.wait [#allocation4], 256  }
   0x5   :  { %103 = vsyncadd [#allocation4], 4294967040  ;;  %v30_v0 = vstv %s132_s0  ;;  %s107_s16 = smov [#allocation6]   ;;  %s42_s20 = sshll.u32 %s134_s2, 4  ;;  %v27_v1 = vld [vmem:[#allocation3] sm:$0xff]  ;;  %v28_v2 = vld [vmem:[#allocation3 + $0x8] sm:$0xff]  ;;  %s43_s20 = int_to_ptr.hbm [resolvable:$true] %s42_s20 }
   0x6   :  { %s40_s17 = sshll.u32 %s107_s16, 4  ;;  %v31_v3 = vmul.f32 %v30_v0, %v27_v1  ;;  %v32_v4 = vmul.f32 %v30_v0, %v28_v2  ;;  %s41_s17 = int_to_ptr.vmem [resolvable:$true] %s40_s17 }
   0x8   :  { %33 = vst [vmem:[#allocation6] sm:$0xff] %v31_v3 }
   0x9   :  { %34 = vst [vmem:[#allocation6 + $0x8] sm:$0xff] %v32_v4 }
   0xa   :  { %45 = dma.vmem_to_hbm [thread:$0]  %s41_s17, 256, %s43_s20, [#allocation5]  }
   0xb   :  { %104 = dma.done.wait [#allocation5], 256  }
   0xc   :  { %105 = vsyncadd [#allocation5], 4294967040 }
   0xd   :  { %50 = vsyncpa [#allocation4], 1 }
   0xe   :  { %51 = vsyncpa [#allocation5], 1 }

</bundles_post_ra>
